<compile_context>
chip_gen: v5e
topology: v5e:2x2
jax: 0.10.0
libtpu: 0.0.40
codegen_flags: <defaults>
</compile_context>

<pallas_src>
import functools

import jax
import jax.numpy as jnp
import numpy as np
from jax import lax
from jax.experimental import pallas as pl
from jax.experimental.pallas import tpu as pltpu


def _dann_kernel(fs_ref, ft_ref, w1_ref, b1_ref, w2_ref, b2_ref, w3_ref, b3_ref,
                 out_ref, acc_ref, *, total_rows):
    pid = pl.program_id(0)
    nsteps = pl.num_programs(0)
    block_rows = fs_ref.shape[0]

    @pl.when(pid == 0)
    def _():
        acc_ref[0] = 0.0   # sum softplus(-z_s)  (source BCE numerator)
        acc_ref[1] = 0.0   # sum softplus(+z_t)  (target BCE numerator)
        acc_ref[2] = 0.0   # source correct count (z >= 0)
        acc_ref[3] = 0.0   # target correct count (z <  0)

    # Fuse this step's source/target row blocks for a single MXU chain (VMEM-only concat;
    # the reference's HBM cat() is never materialized).
    x = jnp.concatenate([fs_ref[...], ft_ref[...]], axis=0)            # (2*br, D) f32

    # bf16 matmul inputs, f32 accumulation; bias add / ReLU in f32.
    h1 = jnp.maximum(
        jnp.dot(x.astype(jnp.bfloat16), w1_ref[...],
                preferred_element_type=jnp.float32) + b1_ref[...], 0.0)
    h2 = jnp.maximum(
        jnp.dot(h1.astype(jnp.bfloat16), w2_ref[...],
                preferred_element_type=jnp.float32) + b2_ref[...], 0.0)

    # Final Linear(H -> 1): (1,Hp) x (2br,Hp)^T -> lane-dense (1, 2*br) logits.
    z = lax.dot_general(w3_ref[...], h2.astype(jnp.bfloat16),
                        dimension_numbers=(((1,), (1,)), ((), ())),
                        preferred_element_type=jnp.float32) + b3_ref[0]   # (1, 2*br)

    lane = lax.broadcasted_iota(jnp.int32, z.shape, 1)
    is_src = lane < block_rows          # first block_rows lanes = source, rest = target

    # BCE from logits via numerically-stable softplus; per-element clamp at 100 mirrors
    # torch.nn.BCELoss's log clamp at -100.
    #   source (label 1): -log(sigmoid(z))     = softplus(-z)
    #   target (label 0): -log(1 - sigmoid(z)) = softplus(+z)
    signed = jnp.where(is_src, -z, z)
    sp = jnp.minimum(jnp.maximum(signed, 0.0) + jnp.log1p(jnp.exp(-jnp.abs(z))), 100.0)

    zero = jnp.zeros_like(sp)
    acc_ref[0] += jnp.sum(jnp.where(is_src, sp, zero))
    acc_ref[1] += jnp.sum(jnp.where(is_src, zero, sp))
    # binary_accuracy: pred = (sigmoid(z) >= 0.5)  <=>  (z >= 0).
    acc_ref[2] += jnp.sum(jnp.where(is_src & (z >= 0.0), 1.0, 0.0))
    acc_ref[3] += jnp.sum(jnp.where(jnp.logical_not(is_src) & (z < 0.0), 1.0, 0.0))

    @pl.when(pid == nsteps - 1)
    def _():
        inv_b = 1.0 / float(total_rows)
        out_ref[0] = 0.5 * (acc_ref[0] + acc_ref[1]) * inv_b           # loss
        out_ref[1] = 50.0 * (acc_ref[2] + acc_ref[3]) * inv_b          # accuracy (%)


def domain_adversarial_loss(f_s, f_t, params, *, block_rows=None):
    """Returns (loss, domain_discriminator_accuracy) like the PyTorch module's forward."""
    w1, b1, w2, b2, w3, b3 = params
    b, d = f_s.shape
    assert f_t.shape == (b, d), "kernel assumes equal source/target batch (torch.chunk halves)"
    h = w1.shape[1]

    # Zero-pad the hidden dim to a lane-dense multiple of 128 (padded columns stay zero
    # through bias/ReLU and contribute nothing to the final logit).
    # TODO(synk): keep the feature dim D a multiple of 128 upstream for lane-dense f tiles.
    pad_h = (-h) % 128
    hp = h + pad_h
    w1p = jnp.pad(w1, ((0, 0), (0, pad_h))).astype(jnp.bfloat16)       # (D,  Hp)
    b1p = jnp.pad(b1, ((0, 0), (0, pad_h))).astype(jnp.float32)        # (1,  Hp)
    w2p = jnp.pad(w2, ((0, pad_h), (0, pad_h))).astype(jnp.bfloat16)   # (Hp, Hp)
    b2p = jnp.pad(b2, ((0, 0), (0, pad_h))).astype(jnp.float32)        # (1,  Hp)
    w3p = jnp.pad(w3, ((0, 0), (0, pad_h))).astype(jnp.bfloat16)       # (1,  Hp)
    b3p = b3.reshape((1,)).astype(jnp.float32)                         # scalar -> SMEM

    if block_rows is None:
        block_rows = b if b <= 512 else 512
    assert b % block_rows == 0, "per-domain batch must be divisible by block_rows"
    assert block_rows % 8 == 0, "block_rows must be a multiple of 8 (sublane tiling)"
    grid = (b // block_rows,)

    grid_spec = pltpu.PrefetchScalarGridSpec(
        num_scalar_prefetch=0,
        grid=grid,
        in_specs=[
            pl.BlockSpec((block_rows, d), lambda i: (i, 0)),            # f_s row block
            pl.BlockSpec((block_rows, d), lambda i: (i, 0)),            # f_t row block
            pl.BlockSpec((d, hp), lambda i: (0, 0)),                    # W1 (resident)
            pl.BlockSpec((1, hp), lambda i: (0, 0)),                    # b1 (resident)
            pl.BlockSpec((hp, hp), lambda i: (0, 0)),                   # W2 (resident)
            pl.BlockSpec((1, hp), lambda i: (0, 0)),                    # b2 (resident)
            pl.BlockSpec((1, hp), lambda i: (0, 0)),                    # w3 (resident)
            pl.BlockSpec(memory_space=pltpu.MemorySpace.SMEM),          # b3 scalar
        ],
        out_specs=pl.BlockSpec(memory_space=pltpu.MemorySpace.SMEM),    # (loss, acc)
        scratch_shapes=[pltpu.SMEM((4,), jnp.float32)],                 # running sums/counts
    )

    flops = 2 * (2 * b) * (d * hp + hp * hp + hp)
    bytes_accessed = (
        (f_s.size + f_t.size) * 4
        + (w1p.size + w2p.size + w3p.size) * 2
        + (b1p.size + b2p.size + b3p.size) * 4
        + 2 * 4)
    cost = pl.CostEstimate(flops=flops, transcendentals=2 * (2 * b),
                           bytes_accessed=bytes_accessed)

    kernel = functools.partial(_dann_kernel, total_rows=b)
    out = pl.pallas_call(
        kernel,
        out_shape=jax.ShapeDtypeStruct((2,), jnp.float32),
        grid_spec=grid_spec,
        compiler_params=pltpu.CompilerParams(
            dimension_semantics=("arbitrary",),
        ),
        cost_estimate=cost,
    )(f_s, f_t, w1p, b1p, w2p, b2p, w3p, b3p)
    return out[0], out[1]


def _reference(f_s, f_t, params):
    """Pure-JAX reference matching the PyTorch module (sigmoid + clamped-log BCE).

    Mirrors the kernel's dtype policy (bf16 matmul inputs, f32 accumulation) so the
    comparison stays tight; the downstream sigmoid/log/threshold math is torch-faithful.
    """
    w1, b1, w2, b2, w3, b3 = params
    f = jnp.concatenate([f_s, f_t], axis=0)
    h1 = jnp.maximum(jnp.dot(f.astype(jnp.bfloat16), w1.astype(jnp.bfloat16),
                             preferred_element_type=jnp.float32) + b1, 0.0)
    h2 = jnp.maximum(jnp.dot(h1.astype(jnp.bfloat16), w2.astype(jnp.bfloat16),
                             preferred_element_type=jnp.float32) + b2, 0.0)
    z = jnp.dot(h2.astype(jnp.bfloat16), w3.astype(jnp.bfloat16).T,
                preferred_element_type=jnp.float32) + b3
    d = jax.nn.sigmoid(z)
    b = f_s.shape[0]
    d_s, d_t = d[:b], d[b:]
    log_ds = jnp.maximum(jnp.log(d_s), -100.0)
    log_1mdt = jnp.maximum(jnp.log(1.0 - d_t), -100.0)
    loss = 0.5 * (jnp.mean(-log_ds) + jnp.mean(-log_1mdt))
    acc = 0.5 * (100.0 * jnp.mean((d_s >= 0.5).astype(jnp.float32))
                 + 100.0 * jnp.mean((d_t < 0.5).astype(jnp.float32)))
    return loss, acc


if __name__ == "__main__":
    # Per-domain batch, feature dim, discriminator hidden dim (H=96 exercises the 128-pad).
    B, D, H = 16, 128, 96

    key = jax.random.PRNGKey(0)
    k_fs, k_ft, k_w1, k_b1, k_w2, k_b2, k_w3, k_b3 = jax.random.split(key, 8)

    f_s = jax.random.normal(k_fs, (B, D), dtype=jnp.float32)
    f_t = jax.random.normal(k_ft, (B, D), dtype=jnp.float32)

    # Deterministic synthetic discriminator parameters (weights stored (in, out)).
    w1 = 0.1 * jax.random.normal(k_w1, (D, H), dtype=jnp.float32)
    b1 = 0.1 * jax.random.normal(k_b1, (1, H), dtype=jnp.float32)
    w2 = 0.1 * jax.random.normal(k_w2, (H, H), dtype=jnp.float32)
    b2 = 0.1 * jax.random.normal(k_b2, (1, H), dtype=jnp.float32)
    w3 = 0.1 * jax.random.normal(k_w3, (1, H), dtype=jnp.float32)   # Linear(H -> 1)
    b3 = 0.1 * jax.random.normal(k_b3, (1, 1), dtype=jnp.float32)

    params = (w1, b1, w2, b2, w3, b3)

    # block_rows=8 with B=16 -> 2 grid steps, exercising the accumulate/finalize path.
    loss, acc = domain_adversarial_loss(f_s, f_t, params, block_rows=8)
    jax.block_until_ready((loss, acc))

    ref_loss, ref_acc = _reference(f_s, f_t, params)
    np.testing.assert_allclose(np.asarray(loss), np.asarray(ref_loss), rtol=1e-3, atol=1e-3)
    np.testing.assert_allclose(np.asarray(acc), np.asarray(ref_acc), rtol=1e-3, atol=1e-3)

    print("KERNEL_OK")
</pallas_src>

<mosaic_0001>
module attributes {stable_mosaic.version = 11 : i64} {
  func.func @_dann_kernel(%arg0: i32, %arg1: memref<8x128xf32, #tpu.memory_space<vmem>>, %arg2: memref<8x128xf32, #tpu.memory_space<vmem>>, %arg3: memref<128x128xbf16, #tpu.memory_space<vmem>>, %arg4: memref<1x128xf32, #tpu.memory_space<vmem>>, %arg5: memref<128x128xbf16, #tpu.memory_space<vmem>>, %arg6: memref<1x128xf32, #tpu.memory_space<vmem>>, %arg7: memref<1x128xbf16, #tpu.memory_space<vmem>>, %arg8: memref<1xf32, #tpu.memory_space<smem>>, %arg9: memref<2xf32, #tpu.memory_space<smem>>, %arg10: memref<4xf32, #tpu.memory_space<smem>>) attributes {dimension_semantics = [#tpu.dimension_semantics<arbitrary>], iteration_bounds = array<i64: 2>, scalar_prefetch = 0 : i64, scratch_operands = 1 : i64, tpu.core_type = #tpu.core_type<tc>, window_params = [{transform_indices = @transform_0, window_bounds = array<i64: 8, 128>}, {transform_indices = @transform_1, window_bounds = array<i64: 8, 128>}, {pipeline_mode = #tpu.pipeline_mode<synchronous>, transform_indices = @transform_2, window_bounds = array<i64: 128, 128>}, {pipeline_mode = #tpu.pipeline_mode<synchronous>, transform_indices = @transform_3, window_bounds = array<i64: 1, 128>}, {pipeline_mode = #tpu.pipeline_mode<synchronous>, transform_indices = @transform_4, window_bounds = array<i64: 128, 128>}, {pipeline_mode = #tpu.pipeline_mode<synchronous>, transform_indices = @transform_5, window_bounds = array<i64: 1, 128>}, {pipeline_mode = #tpu.pipeline_mode<synchronous>, transform_indices = @transform_6, window_bounds = array<i64: 1, 128>}, {transform_indices = @transform_7, window_bounds = array<i64: 1>}, {transform_indices = @transform_8, window_bounds = array<i64: 2>}]} {
    %c0_i32 = arith.constant 0 : i32
    %0 = arith.cmpi eq, %arg0, %c0_i32 : i32
    %1 = arith.extui %0 : i1 to i32
    %c0_i32_0 = arith.constant 0 : i32
    %2 = arith.cmpi ne, %1, %c0_i32_0 : i32
    scf.if %2 {
      %cst_41 = arith.constant 0.000000e+00 : f32
      %c0_42 = arith.constant 0 : index
      %91 = memref.load %arg10[%c0_42] : memref<4xf32, #tpu.memory_space<smem>>
      memref.store %cst_41, %arg10[%c0_42] : memref<4xf32, #tpu.memory_space<smem>>
      %cst_43 = arith.constant 0.000000e+00 : f32
      %c1_44 = arith.constant 1 : index
      %92 = memref.load %arg10[%c1_44] : memref<4xf32, #tpu.memory_space<smem>>
      memref.store %cst_43, %arg10[%c1_44] : memref<4xf32, #tpu.memory_space<smem>>
      %cst_45 = arith.constant 0.000000e+00 : f32
      %c2_46 = arith.constant 2 : index
      %93 = memref.load %arg10[%c2_46] : memref<4xf32, #tpu.memory_space<smem>>
      memref.store %cst_45, %arg10[%c2_46] : memref<4xf32, #tpu.memory_space<smem>>
      %cst_47 = arith.constant 0.000000e+00 : f32
      %c3_48 = arith.constant 3 : index
      %94 = memref.load %arg10[%c3_48] : memref<4xf32, #tpu.memory_space<smem>>
      memref.store %cst_47, %arg10[%c3_48] : memref<4xf32, #tpu.memory_space<smem>>
    } else {
    }
    %c0 = arith.constant 0 : index
    %c0_1 = arith.constant 0 : index
    %3 = vector.load %arg1[%c0, %c0_1] : memref<8x128xf32, #tpu.memory_space<vmem>>, vector<8x128xf32>
    %c0_2 = arith.constant 0 : index
    %c0_3 = arith.constant 0 : index
    %4 = vector.load %arg2[%c0_2, %c0_3] : memref<8x128xf32, #tpu.memory_space<vmem>>, vector<8x128xf32>
    %5 = tpu.concatenate %3, %4 in 0 : vector<8x128xf32>, vector<8x128xf32> -> vector<16x128xf32>
    %6 = arith.truncf %5 : vector<16x128xf32> to vector<16x128xbf16>
    %c0_4 = arith.constant 0 : index
    %c0_5 = arith.constant 0 : index
    %7 = vector.load %arg3[%c0_4, %c0_5] : memref<128x128xbf16, #tpu.memory_space<vmem>>, vector<128x128xbf16>
    %cst = arith.constant dense<0.000000e+00> : vector<16x128xf32>
    %8 = tpu.matmul %6, %7, %cst {dimension_numbers = #tpu.dot_dimension_numbers<[1], [0], [0], [1], [0, 0, 1, 1], [], []>} : vector<16x128xbf16>, vector<128x128xbf16>, vector<16x128xf32> -> vector<16x128xf32>
    %c0_6 = arith.constant 0 : index
    %c0_7 = arith.constant 0 : index
    %9 = vector.load %arg4[%c0_6, %c0_7] : memref<1x128xf32, #tpu.memory_space<vmem>>, vector<1x128xf32>
    %10 = vector.broadcast %9 : vector<1x128xf32> to vector<16x128xf32>
    %11 = arith.addf %8, %10 : vector<16x128xf32>
    %cst_8 = arith.constant 0.000000e+00 : f32
    %12 = vector.broadcast %cst_8 : f32 to vector<16x128xf32>
    %13 = arith.maximumf %11, %12 : vector<16x128xf32>
    %14 = arith.truncf %13 : vector<16x128xf32> to vector<16x128xbf16>
    %c0_9 = arith.constant 0 : index
    %c0_10 = arith.constant 0 : index
    %15 = vector.load %arg5[%c0_9, %c0_10] : memref<128x128xbf16, #tpu.memory_space<vmem>>, vector<128x128xbf16>
    %cst_11 = arith.constant dense<0.000000e+00> : vector<16x128xf32>
    %16 = tpu.matmul %14, %15, %cst_11 {dimension_numbers = #tpu.dot_dimension_numbers<[1], [0], [0], [1], [0, 0, 1, 1], [], []>} : vector<16x128xbf16>, vector<128x128xbf16>, vector<16x128xf32> -> vector<16x128xf32>
    %c0_12 = arith.constant 0 : index
    %c0_13 = arith.constant 0 : index
    %17 = vector.load %arg6[%c0_12, %c0_13] : memref<1x128xf32, #tpu.memory_space<vmem>>, vector<1x128xf32>
    %18 = vector.broadcast %17 : vector<1x128xf32> to vector<16x128xf32>
    %19 = arith.addf %16, %18 : vector<16x128xf32>
    %cst_14 = arith.constant 0.000000e+00 : f32
    %20 = vector.broadcast %cst_14 : f32 to vector<16x128xf32>
    %21 = arith.maximumf %19, %20 : vector<16x128xf32>
    %c0_15 = arith.constant 0 : index
    %c0_16 = arith.constant 0 : index
    %22 = vector.load %arg7[%c0_15, %c0_16] : memref<1x128xbf16, #tpu.memory_space<vmem>>, vector<1x128xbf16>
    %23 = arith.truncf %21 : vector<16x128xf32> to vector<16x128xbf16>
    %cst_17 = arith.constant dense<0.000000e+00> : vector<1x16xf32>
    %24 = tpu.matmul %22, %23, %cst_17 {dimension_numbers = #tpu.dot_dimension_numbers<[1], [1], [0], [0], [0, 0, 1, 0], [], []>} : vector<1x128xbf16>, vector<16x128xbf16>, vector<1x16xf32> -> vector<1x16xf32>
    %c0_18 = arith.constant 0 : index
    %25 = memref.load %arg8[%c0_18] : memref<1xf32, #tpu.memory_space<smem>>
    %26 = vector.broadcast %25 : f32 to vector<1x16xf32>
    %27 = arith.addf %24, %26 : vector<1x16xf32>
    %28 = tpu.iota {dimensions = array<i32: 1>} : vector<1x16xi32>
    %c8_i32 = arith.constant 8 : i32
    %29 = vector.broadcast %c8_i32 : i32 to vector<1x16xi32>
    %30 = arith.cmpi slt, %28, %29 : vector<1x16xi32>
    %cst_19 = arith.constant 0.000000e+00 : f32
    %31 = vector.broadcast %cst_19 : f32 to vector<1x16xf32>
    %32 = arith.subf %31, %27 : vector<1x16xf32>
    %33 = arith.select %30, %32, %27 : vector<1x16xi1>, vector<1x16xf32>
    %cst_20 = arith.constant 0.000000e+00 : f32
    %34 = vector.broadcast %cst_20 : f32 to vector<1x16xf32>
    %35 = arith.maximumf %33, %34 : vector<1x16xf32>
    %36 = math.absf %27 : vector<1x16xf32>
    %cst_21 = arith.constant 0.000000e+00 : f32
    %37 = vector.broadcast %cst_21 : f32 to vector<1x16xf32>
    %38 = arith.subf %37, %36 : vector<1x16xf32>
    %39 = math.exp %38 : vector<1x16xf32>
    %40 = math.log1p %39 : vector<1x16xf32>
    %41 = arith.addf %35, %40 : vector<1x16xf32>
    %cst_22 = arith.constant 1.000000e+02 : f32
    %42 = vector.broadcast %cst_22 : f32 to vector<1x16xf32>
    %43 = arith.minimumf %41, %42 : vector<1x16xf32>
    %cst_23 = arith.constant 0.000000e+00 : f32
    %44 = vector.broadcast %cst_23 : f32 to vector<1x16xf32>
    %c0_24 = arith.constant 0 : index
    %45 = memref.load %arg10[%c0_24] : memref<4xf32, #tpu.memory_space<smem>>
    %46 = arith.select %30, %43, %44 : vector<1x16xi1>, vector<1x16xf32>
    %47 = vector.shape_cast %46 : vector<1x16xf32> to vector<1x1x16xf32>
    %cst_25 = arith.constant dense<0.000000e+00> : vector<1xf32>
    %48 = vector.multi_reduction <add>, %47, %cst_25 [1, 2] : vector<1x1x16xf32> to vector<1xf32>
    %49 = vector.shape_cast %48 : vector<1xf32> to vector<1x1x1xf32>
    %50 = vector.extract %49[0, 0, 0] : f32 from vector<1x1x1xf32>
    %51 = arith.addf %45, %50 : f32
    %c0_26 = arith.constant 0 : index
    %52 = memref.load %arg10[%c0_26] : memref<4xf32, #tpu.memory_space<smem>>
    memref.store %51, %arg10[%c0_26] : memref<4xf32, #tpu.memory_space<smem>>
    %c1 = arith.constant 1 : index
    %53 = memref.load %arg10[%c1] : memref<4xf32, #tpu.memory_space<smem>>
    %54 = arith.select %30, %44, %43 : vector<1x16xi1>, vector<1x16xf32>
    %55 = vector.shape_cast %54 : vector<1x16xf32> to vector<1x1x16xf32>
    %cst_27 = arith.constant dense<0.000000e+00> : vector<1xf32>
    %56 = vector.multi_reduction <add>, %55, %cst_27 [1, 2] : vector<1x1x16xf32> to vector<1xf32>
    %57 = vector.shape_cast %56 : vector<1xf32> to vector<1x1x1xf32>
    %58 = vector.extract %57[0, 0, 0] : f32 from vector<1x1x1xf32>
    %59 = arith.addf %53, %58 : f32
    %c1_28 = arith.constant 1 : index
    %60 = memref.load %arg10[%c1_28] : memref<4xf32, #tpu.memory_space<smem>>
    memref.store %59, %arg10[%c1_28] : memref<4xf32, #tpu.memory_space<smem>>
    %c2 = arith.constant 2 : index
    %61 = memref.load %arg10[%c2] : memref<4xf32, #tpu.memory_space<smem>>
    %cst_29 = arith.constant 0.000000e+00 : f32
    %62 = vector.broadcast %cst_29 : f32 to vector<1x16xf32>
    %63 = arith.cmpf oge, %27, %62 : vector<1x16xf32>
    %64 = arith.andi %30, %63 : vector<1x16xi1>
    %cst_30 = arith.constant 1.000000e+00 : f32
    %cst_31 = arith.constant 0.000000e+00 : f32
    %65 = vector.broadcast %cst_30 : f32 to vector<1x16xf32>
    %66 = vector.broadcast %cst_31 : f32 to vector<1x16xf32>
    %67 = arith.select %64, %65, %66 : vector<1x16xi1>, vector<1x16xf32>
    %68 = vector.shape_cast %67 : vector<1x16xf32> to vector<1x1x16xf32>
    %cst_32 = arith.constant dense<0.000000e+00> : vector<1xf32>
    %69 = vector.multi_reduction <add>, %68, %cst_32 [1, 2] : vector<1x1x16xf32> to vector<1xf32>
    %70 = vector.shape_cast %69 : vector<1xf32> to vector<1x1x1xf32>
    %71 = vector.extract %70[0, 0, 0] : f32 from vector<1x1x1xf32>
    %72 = arith.addf %61, %71 : f32
    %c2_33 = arith.constant 2 : index
    %73 = memref.load %arg10[%c2_33] : memref<4xf32, #tpu.memory_space<smem>>
    memref.store %72, %arg10[%c2_33] : memref<4xf32, #tpu.memory_space<smem>>
    %c3 = arith.constant 3 : index
    %74 = memref.load %arg10[%c3] : memref<4xf32, #tpu.memory_space<smem>>
    %cst_34 = arith.constant dense<true> : vector<1x16xi1>
    %75 = arith.xori %30, %cst_34 : vector<1x16xi1>
    %cst_35 = arith.constant 0.000000e+00 : f32
    %76 = vector.broadcast %cst_35 : f32 to vector<1x16xf32>
    %77 = arith.cmpf olt, %27, %76 : vector<1x16xf32>
    %78 = arith.andi %75, %77 : vector<1x16xi1>
    %cst_36 = arith.constant 1.000000e+00 : f32
    %cst_37 = arith.constant 0.000000e+00 : f32
    %79 = vector.broadcast %cst_36 : f32 to vector<1x16xf32>
    %80 = vector.broadcast %cst_37 : f32 to vector<1x16xf32>
    %81 = arith.select %78, %79, %80 : vector<1x16xi1>, vector<1x16xf32>
    %82 = vector.shape_cast %81 : vector<1x16xf32> to vector<1x1x16xf32>
    %cst_38 = arith.constant dense<0.000000e+00> : vector<1xf32>
    %83 = vector.multi_reduction <add>, %82, %cst_38 [1, 2] : vector<1x1x16xf32> to vector<1xf32>
    %84 = vector.shape_cast %83 : vector<1xf32> to vector<1x1x1xf32>
    %85 = vector.extract %84[0, 0, 0] : f32 from vector<1x1x1xf32>
    %86 = arith.addf %74, %85 : f32
    %c3_39 = arith.constant 3 : index
    %87 = memref.load %arg10[%c3_39] : memref<4xf32, #tpu.memory_space<smem>>
    memref.store %86, %arg10[%c3_39] : memref<4xf32, #tpu.memory_space<smem>>
    %c1_i32 = arith.constant 1 : i32
    %88 = arith.cmpi eq, %arg0, %c1_i32 : i32
    %89 = arith.extui %88 : i1 to i32
    %c0_i32_40 = arith.constant 0 : i32
    %90 = arith.cmpi ne, %89, %c0_i32_40 : i32
    scf.if %90 {
      %c0_41 = arith.constant 0 : index
      %91 = memref.load %arg10[%c0_41] : memref<4xf32, #tpu.memory_space<smem>>
      %c1_42 = arith.constant 1 : index
      %92 = memref.load %arg10[%c1_42] : memref<4xf32, #tpu.memory_space<smem>>
      %93 = arith.addf %91, %92 : f32
      %cst_43 = arith.constant 5.000000e-01 : f32
      %94 = arith.mulf %cst_43, %93 : f32
      %cst_44 = arith.constant 6.250000e-02 : f32
      %95 = arith.mulf %94, %cst_44 : f32
      %c0_45 = arith.constant 0 : index
      %96 = memref.load %arg9[%c0_45] : memref<2xf32, #tpu.memory_space<smem>>
      memref.store %95, %arg9[%c0_45] : memref<2xf32, #tpu.memory_space<smem>>
      %c2_46 = arith.constant 2 : index
      %97 = memref.load %arg10[%c2_46] : memref<4xf32, #tpu.memory_space<smem>>
      %c3_47 = arith.constant 3 : index
      %98 = memref.load %arg10[%c3_47] : memref<4xf32, #tpu.memory_space<smem>>
      %99 = arith.addf %97, %98 : f32
      %cst_48 = arith.constant 5.000000e+01 : f32
      %100 = arith.mulf %cst_48, %99 : f32
      %cst_49 = arith.constant 6.250000e-02 : f32
      %101 = arith.mulf %100, %cst_49 : f32
      %c1_50 = arith.constant 1 : index
      %102 = memref.load %arg9[%c1_50] : memref<2xf32, #tpu.memory_space<smem>>
      memref.store %101, %arg9[%c1_50] : memref<2xf32, #tpu.memory_space<smem>>
    } else {
    }
    return
  }
  func.func @transform_0(%arg0: i32) -> (i32, i32) {
    %c0_i32 = arith.constant 0 : i32
    %c0_i32_0 = arith.constant 0 : i32
    return %arg0, %c0_i32 : i32, i32
  }
  func.func @transform_1(%arg0: i32) -> (i32, i32) {
    %c0_i32 = arith.constant 0 : i32
    %c0_i32_0 = arith.constant 0 : i32
    return %arg0, %c0_i32 : i32, i32
  }
  func.func @transform_2(%arg0: i32) -> (i32, i32) {
    %c0_i32 = arith.constant 0 : i32
    %c0_i32_0 = arith.constant 0 : i32
    %c0_i32_1 = arith.constant 0 : i32
    return %c0_i32, %c0_i32_0 : i32, i32
  }
  func.func @transform_3(%arg0: i32) -> (i32, i32) {
    %c0_i32 = arith.constant 0 : i32
    %c0_i32_0 = arith.constant 0 : i32
    %c0_i32_1 = arith.constant 0 : i32
    return %c0_i32, %c0_i32_0 : i32, i32
  }
  func.func @transform_4(%arg0: i32) -> (i32, i32) {
    %c0_i32 = arith.constant 0 : i32
    %c0_i32_0 = arith.constant 0 : i32
    %c0_i32_1 = arith.constant 0 : i32
    return %c0_i32, %c0_i32_0 : i32, i32
  }
  func.func @transform_5(%arg0: i32) -> (i32, i32) {
    %c0_i32 = arith.constant 0 : i32
    %c0_i32_0 = arith.constant 0 : i32
    %c0_i32_1 = arith.constant 0 : i32
    return %c0_i32, %c0_i32_0 : i32, i32
  }
  func.func @transform_6(%arg0: i32) -> (i32, i32) {
    %c0_i32 = arith.constant 0 : i32
    %c0_i32_0 = arith.constant 0 : i32
    %c0_i32_1 = arith.constant 0 : i32
    return %c0_i32, %c0_i32_0 : i32, i32
  }
  func.func @transform_7(%arg0: i32) -> i32 {
    %c0_i32 = arith.constant 0 : i32
    %c0_i32_0 = arith.constant 0 : i32
    return %c0_i32 : i32
  }
  func.func @transform_8(%arg0: i32) -> i32 {
    %c0_i32 = arith.constant 0 : i32
    %c0_i32_0 = arith.constant 0 : i32
    return %c0_i32 : i32
  }
}

</mosaic_0001>

<bundles_post_ra>
// kernel: tpu_custom_call.1
= control target key start
LH: loop header
LB: loop body
LE: loop exit
PB: predicated region body
PF: predicated region fallthrough
CT: control target
= control target key end

     0   :  { %s1411_s0 = inlined_call_operand.hbm [shape: f32[16,128], index: 0, kind: input, shape index: {}]   ;;  %s1412_s1 = inlined_call_operand.hbm [shape: f32[16,128], index: 1, kind: input, shape index: {}]   ;;  %s1413_s2 = inlined_call_operand.hbm [shape: bf16[128,128], index: 2, kind: input, shape index: {}]   ;;  %s1414_s3 = inlined_call_operand.vmem [shape: f32[1,128], index: 3, kind: input, shape index: {}]   ;;  %s1415_s4 = inlined_call_operand.hbm [shape: bf16[128,128], index: 4, kind: input, shape index: {}]   ;;  %s1416_s5 = inlined_call_operand.vmem [shape: f32[1,128], index: 5, kind: input, shape index: {}]   ;;  %s1417_s6 = inlined_call_operand.vmem [shape: bf16[1,128], index: 6, kind: input, shape index: {}]   ;;  %s1418_s7 = inlined_call_operand.<no memory space> [shape: f32[1], index: 7, kind: input, shape index: {}]   ;;  %s1419_s8 = inlined_call_operand.hbm [shape: f32[2], index: 8, kind: output, shape index: {}]  }
   0x1   :  { %1420 = sst [smem:[#allocation18_spill]] %s1413_s2 }
   0x2   :  { %1421 = sst [smem:[#allocation19_spill]] %s1415_s4 }
   0x3   :  { %13 = sst [smem:[#allocation3]] %s1418_s7 }
   0x4   :  { %14 = vsyncpa [#allocation5], 0 }
   0x5   :  { %16 = vsyncpa [#allocation5 + $0x1], 0 }
   0x6   :  { %17 = vsyncpa [#allocation8], 0 }
   0x7   :  { %19 = vsyncpa [#allocation8 + $0x1], 0 }
   0x8   :  { %20 = vsyncpa [#allocation11], 0 }
   0x9   :  { %21 = vsyncpa [#allocation6], 0  ;;  %s1240_s29 = smov 0   ;;  %s1242_s30 = smov 0  }
   0xa   :  { %s1244_s9 = smov 0   ;;  %s1246_s10 = smov 0  }
   0xb LB: > { %s1422_s2 = sld [smem:[#allocation18_spill]]  ;;  %s1264_s13 = sadd.s32 4294967295, %s1182_s10   ;;  %s1182_s10 = sphi %s1246_s10, %s1430_s10   ;;  %s1178_s9 = sphi %s1244_s9, %s1429_s9   ;;  %s1174_s30 = sphi %s1242_s30, %s1428_s30   ;;  %s1170_s29 = sphi %s1240_s29, %s1427_s29  }
   0xc   : > { %p792_p0 = scmp.ge.s32.totalorder %s1182_s10, 1  ;;  %p48_p1 = scmp.eq.s32.totalorder %s1264_s13, 0 }
   0xd   : > { %p231_p2 = scmp.lt.s32.totalorder %s1182_s10, 3  ;;  %s1184_s15 = smov [#allocation9]  }
   0xe   : > { %s244_s16 = sshll.u32 %s1184_s15, 4  ;;  %s1424_s4 = sld [smem:[#allocation19_spill]]  ;;  %s245_s16 = int_to_ptr.vmem [resolvable:$true] %s244_s16 }
   0xf   : > { %p1269_p3 = pnand %p792_p0, %p231_p2  ;;  %s1185_s20 = smov [#allocation10]  }
  0x10   : > { %s261_s21 = sshll.u32 %s1185_s20, 4  ;;  %s1186_s22 = smov 64   ;;  %s262_s21 = int_to_ptr.vmem [resolvable:$true] %s261_s21 }
  0x11   : > { %s242_s12 = sshll.u32 %s1422_s2, 4  ;;  %p929_p4 = pneg %p1269_p3  ;;  %s243_s12 = int_to_ptr.hbm [resolvable:$true] %s242_s12 }
  0x12   : > { %s1187_s23 = smov 4   ;;  %s1281_s24 = sadd.s32 1, %s1182_s10  }
  0x13   : > { %p930_p5 = pnand %p929_p4, %p48_p1  ;;  %s34_s25 = sadd.s32 1, %s1178_s9 }
  0x14   : > { %s259_s19 = sshll.u32 %s1424_s4, 4  ;;  %s31_s26 = ssub.s32 %s1182_s10, %s1281_s24  ;;  %s260_s19 = int_to_ptr.hbm [resolvable:$true] %s259_s19 }
  0x15   : > { %932 = dma.hbm_to_vmem [thread:$0]  (!%p930_p5), %s243_s12, 1024, %s245_s16, [#allocation8], %s1186_s22, %s1186_s22, %s1187_s23  }
  0x16   : > { %935 = dma.hbm_to_vmem [thread:$0]  (!%p930_p5), %s260_s19, 1024, %s262_s21, [#allocation11], %s1186_s22, %s1186_s22, %s1187_s23  }
  0x17   : > { %p41_p6 = scmp.ne.s32.totalorder %s1178_s9, %s1174_s30  ;;  %p32_p7 = scmp.eq.s32.totalorder %s31_s26, 0 }
  0x18   : > { %p42_p8 = scmp.eq.s32.totalorder %s1182_s10, 0  ;;  %p47_p9 = scmp.ne.s32.totalorder %s1174_s30, %s1170_s29 }
  0x19   : > { %p945_p10 = scmp.lt.s32.totalorder %s1182_s10, 2  ;;  %s284_s7 = sand.u32 1, %s1178_s9  }
  0x1a   : > { %s1293_s27 = scalar_select %p32_p7, %s1178_s9, %s34_s25  }
  0x1b   : > { %p43_p11 = por %p42_p8, %p41_p6  ;;  %p1297_p12 = por %p48_p1, %p47_p9 }
  0x1c   : > { %s797_s11 = sshll.u32 %s1182_s10, 3  ;;  %s796_s12 = sshll.u32 %s284_s7, 3 }
  0x1d   : > { %s292_s17 = scalar_lea.hbm %s1411_s0, %s797_s11  ;;  %s288_s19 = scalar_lea.vmem [#allocation4], %s796_s12 }
  0x1e   : > { %s294_s18 = sshll.u32 %s292_s17, 4  ;;  %s296_s29 = sshll.u32 %s288_s19, 4  ;;  %s295_s18 = int_to_ptr.hbm [resolvable:$true] %s294_s18  ;;  %s297_s29 = int_to_ptr.vmem [resolvable:$true] %s296_s29 }
  0x1f   : > { %p1308_p13 = pnand %p945_p10, %p43_p11  ;;  %s311_s23 = scalar_lea.hbm %s1412_s1, %s797_s11 }
  0x20   : > { %s303_s25 = sand.u32 1, %s1182_s10   ;;  %s285_s26 = scalar_lea.sflag [#allocation5], %s284_s7 }
  0x21   : > { %s1058_s15 = sshra.s32 %s295_s18, 4  ;;  %p1062_p2 = pneg %p1308_p13  ;;  %s1059_s15 = int_to_ptr.hbm [resolvable:$true] %s1058_s15 }
  0x22   : > { %s1060_s16 = scalar_lea.hbm %s1059_s15, 8  ;;  %s1065_s2 = scalar_lea.hbm %s1411_s0, 16 }
  0x23   : > { %p1061_p0 = scmp.ne.s32.totalorder %s1059_s15, %s1060_s16  ;;  %p1066_p6 = scmp.lt.s32.totalorder %s1059_s15, %s1411_s0 }
  0x24   : > { %p1067_p7 = scmp.lt.s32.totalorder %s1065_s2, %s1060_s16 }
  0x25   : > { %p1063_p4 = pnand %p1062_p2, %p1061_p0 }
  0x26   : > { %p1068_p8 = por %p1067_p7, %p1066_p6 }
  0x27   : > { %p1064_p5 = pneg %p1063_p4 }
  0x29   : > { %p1069_p9 = pnand %p1068_p8, %p1064_p5 }
  0x2b   : > { %1072 = shalt.err (!%p1069_p9)
}
  0x2c   : > { %939 = dma.hbm_to_vmem [thread:$0]  (!%p1308_p13), %s295_s18, 128, %s297_s29, %s285_s26  }
  0x2d   : > { %s313_s10 = sshll.u32 %s311_s23, 4  ;;  %s307_s7 = scalar_lea.vmem [#allocation7], %s796_s12  ;;  %s314_s10 = int_to_ptr.hbm [resolvable:$true] %s313_s10 }
  0x2e   : > { %s315_s11 = sshll.u32 %s307_s7, 4  ;;  %s304_s4 = scalar_lea.sflag [#allocation8], %s303_s25  ;;  %s316_s11 = int_to_ptr.vmem [resolvable:$true] %s315_s11 }
  0x2f   : > { %s1088_s17 = sshra.s32 %s314_s10, 4  ;;  %s1095_s16 = scalar_lea.hbm %s1412_s1, 16  ;;  %s1089_s17 = int_to_ptr.hbm [resolvable:$true] %s1088_s17 }
  0x30   : > { %s1090_s19 = scalar_lea.hbm %s1089_s17, 8  ;;  %p1096_p4 = scmp.lt.s32.totalorder %s1089_s17, %s1412_s1 }
  0x31   : > { %p1091_p10 = scmp.ne.s32.totalorder %s1089_s17, %s1090_s19  ;;  %p1097_p5 = scmp.lt.s32.totalorder %s1095_s16, %s1090_s19 }
  0x33   : > { %p1093_p11 = pnand %p1091_p10, %p1062_p2  ;;  %p1098_p6 = por %p1097_p5, %p1096_p4 }
  0x35   : > { %p1094_p0 = pneg %p1093_p11 }
  0x37   : > { %p1099_p7 = pnand %p1098_p6, %p1094_p0 }
  0x39   : > { %1102 = shalt.err (!%p1099_p7)
}
  0x3a   : > { %942 = dma.hbm_to_vmem [thread:$0]  (!%p1308_p13), %s314_s10, 128, %s316_s11, %s304_s4  }
  0x3b   : > { %324 = sbr.rel (%p1269_p3) target bundleno = 761 (0x2f9), region = 52  ;;  %s326_s12 = sand.u32 (!%p1269_p3), 1, %s1174_s30  }
  0x3c   : > { %s1343_s29 = sshll.u32 (!%p1269_p3), %s326_s12, 3  ;;  %s327_s23 = scalar_lea.sflag (!%p1269_p3), [#allocation5], %s326_s12 }
  0x3d   : > { %s330_s25 = scalar_lea.vmem (!%p1269_p3), [#allocation4], %s1343_s29 }
  0x40   : > { %1149 = dma.done.wait (%p1297_p12), %s327_s23, 128  }
  0x41   : > { %1151 = vsyncadd (%p1297_p12), %s327_s23, 4294967168  ;;  %s336_s4 = sand.u32 1, %s1264_s13   ;;  %s340_s14 = scalar_lea.vmem [#allocation7], %s1343_s29 }
  0x42   : > { %s337_s20 = scalar_lea.sflag [#allocation8], %s336_s4 }
  0x43   : > { %1153 = dma.done.wait (%p1297_p12), %s337_s20, 128  }
  0x44   : > { %1155 = vsyncadd (%p1297_p12), %s337_s20, 4294967168 }
  0x45   : > { %1157 = dma.done.wait (%p48_p1), [#allocation8], 1024  }
  0x46   : > { %1159 = vsyncadd (%p48_p1), [#allocation8], 4294966272 }
  0x47   : > { %1161 = dma.done.wait (%p48_p1), [#allocation11], 1024  }
  0x48   : > { %1163 = vsyncadd (%p48_p1), [#allocation11], 4294966272  ;;  %v888_v0 = vld [vmem:[#allocation9 + $0x38] sm:$0xff]  ;;  %v887_v1 = vld [vmem:[#allocation9 + $0x30] sm:$0xff]  ;;  %s571_s17 = sld [smem:[#allocation3]]  ;;  %v586_v36 = vlaneseq  ;;  %vm609_vm1 = vcmask 122880  }
  0x49   : > { %468 = vmatpush.bf16.msra.mxu0 %v888_v0  ;;  %v896_v2 = vld [vmem:[#allocation10 + $0x38] sm:$0xff]  ;;  %v895_v3 = vld [vmem:[#allocation10 + $0x30] sm:$0xff]  ;;  %v886_v4 = vld [vmem:[#allocation9 + $0x28] sm:$0xff]  ;;  %v1188_v43 = vmov 0.0   ;;  %vm1189_vm4 = vmmov 1   ;;  %s1190_s19 = smov 0.0  }
  0x4a   : > { %553 = vmatpush.bf16.msra.mxu1 %v896_v2  ;;  %v894_v5 = vld [vmem:[#allocation10 + $0x28] sm:$0xff]  ;;  %v885_v6 = vld [vmem:[#allocation9 + $0x20] sm:$0xff]  ;;  %v884_v8 = vld [vmem:[#allocation9 + $0x18] sm:$0xff]  ;;  %v587_v37 = vand.u32 127, %v586_v36  ;;  %918 = sst [smem:[#allocation2]] (%p48_p1), %s1190_s19  ;;  %s697_s11 = sshll.u32 %s1419_s8, 4  ;;  %s698_s11 = int_to_ptr.hbm [resolvable:$true] %s697_s11 }
  0x4b   : > { %v893_v7 = vld [vmem:[#allocation10 + $0x20] sm:$0xff]  ;;  %v883_v9 = vld [vmem:[#allocation9 + $0x10] sm:$0xff]  ;;  %v882_v10 = vld [vmem:[#allocation9 + $0x8] sm:$0xff]  ;;  %919 = sst [smem:[#allocation2 + $0x1]] (%p48_p1), %s1190_s19 }
  0x4c   : > { %v881_v11 = vld [vmem:[#allocation9] sm:$0xff]  ;;  %v398_v13 = vld [vmem:[%s340_s14] sm:$0xff]  ;;  %v890_v17 = vld [vmem:[#allocation10 + $0x8] sm:$0xff]  ;;  %vm588_vm0 = vcmp.lt.s32.totalorder %v587_v37, 8  ;;  %920 = sst [smem:[#allocation2 + $0x2]] (%p48_p1), %s1190_s19 }
  0x4d   : > { %469 = vmatpush.bf16.msra.mxu0 %v887_v1  ;;  %v397_v12 = vld [vmem:[%s330_s25] sm:$0xff]  ;;  %v892_v15 = vld [vmem:[#allocation10 + $0x18] sm:$0xff]  ;;  %v891_v16 = vld [vmem:[#allocation10 + $0x10] sm:$0xff]  ;;  %921 = sst [smem:[#allocation2 + $0x3]] (%p48_p1), %s1190_s19  ;;  %p949_p1 = scmp.eq.s32.totalorder %s1264_s13, 1 }
  0x4e   : > { %554 = vmatpush.bf16.msra.mxu1 %v895_v3  ;;  %v399_v14 = vpack.c.bf16 %v398_v13, %v397_v12  ;;  %v889_v18 = vld [vmem:[#allocation10] sm:$0xff]  ;;  %v572_v38 = vstv %s571_s17  ;;  %vm656_vm5 = vmxor %vm588_vm0, %vm1189_vm4  ;;  %s607_s2 = sld [smem:[#allocation2]] }
  0x4f   : > { %v992_v20 = vld [vmem:[%s1414_s3] ss:$0 sm:$0xff]  ;;  %s870_s16 = sld [smem:[#allocation2 + $0x1]] }
  0x50   : > { %v993_v28 = vld [vmem:[%s1416_s5] ss:$0 sm:$0xff]  ;;  %s871_s18 = sld [smem:[#allocation2 + $0x2]] }
  0x51   : > { %470 = vmatpush.bf16.msra.mxu0 %v886_v4  ;;  %v569_v35 = vld [vmem:[%s1417_s6] sm:$0x1]  ;;  %s872_s12 = sld [smem:[#allocation2 + $0x3]] }
  0x52   : > { %555 = vmatpush.bf16.msra.mxu1 %v894_v5 }
  0x55   : > { %471 = vmatpush.bf16.msra.mxu0 %v885_v6 }
  0x56   : > { %556 = vmatpush.bf16.msra.mxu1 %v893_v7 }
  0x59   : > { %472 = vmatpush.bf16.msra.mxu0 %v884_v8 }
  0x5a   : > { %557 = vmatpush.bf16.msra.mxu1 %v892_v15 }
  0x5d   : > { %473 = vmatpush.bf16.msra.mxu0 %v883_v9 }
  0x5e   : > { %558 = vmatpush.bf16.msra.mxu1 %v891_v16 }
  0x61   : > { %474 = vmatpush.bf16.msra.mxu0 %v882_v10 }
  0x62   : > { %559 = vmatpush.bf16.msra.mxu1 %v890_v17 }
  0x65   : > { %475 = vmatpush.bf16.msra.mxu0 %v881_v11 }
  0x66   : > { %560 = vmatpush.bf16.msra.mxu1 %v889_v18 }
  0x68   : > { %476 = vmatmul.bf16.vlgmr.msra.gmra.mxu0 %v399_v14 }
  0xe5   : > { %v477_v19 = vpop.f32.mrf.mxu0 }
  0xe6   : > { %v478_v21 = vadd.f32 %v992_v20, %v477_v19 }
  0xe8   : > { %v482_v24 = vmax.f32 %v478_v21, 0.0 }
  0xed   : > { %v479_v22 = vpop.f32.mrf.mxu0 }
  0xee   : > { %v480_v23 = vadd.f32 %v992_v20, %v479_v22 }
  0xf0   : > { %v483_v25 = vmax.f32 %v480_v23, 0.0 }
  0xf2   : > { %v484_v26 = vpack.c.bf16 %v483_v25, %v482_v24 }
  0xf4   : > { %561 = vmatmul.bf16.vlgmr.msra.gmra.mxu1 %v484_v26 }
 0x171   : > { %v562_v27 = vpop.f32.mrf.mxu1 }
 0x172   : > { %v563_v29 = vadd.f32 %v993_v28, %v562_v27 }
 0x174   : > { %v567_v32 = vmax.f32 %v563_v29, 0.0 }
 0x179   : > { %v564_v30 = vpop.f32.mrf.mxu1 }
 0x17a   : > { %v565_v31 = vadd.f32 %v993_v28, %v564_v30 }
 0x17c   : > { %v568_v33 = vmax.f32 %v565_v31, 0.0 }
 0x17e   : > { %v570_v34 = vpack.c.bf16 %v568_v33, %v567_v32 }
 0x180   : > { %580 = vmatpush.bf16.xpose.msra.mxu2 %v570_v34 }
 0x187   : > { %581 = vmatmul.bf16.vlgmr.msra.gmra.mxu2 %v569_v35 }
 0x20a   : > { %v582_v39 = vpop.f32.mrf.mxu2 }
 0x20b   : > { %v583_v40 = vadd.f32 %v582_v39, %v572_v38 }
 0x20d   : > { %v592_v41 = vand.u32 2147483647, %v583_v40  ;;  %vm639_vm2 = vcmp.ge.f32.partialorder %v583_v40, 0.0  ;;  %vm657_vm6 = vcmp.lt.f32.partialorder %v583_v40, 0.0  ;;  %v589_v53 = vsub.f32 0.0, %v583_v40 }
 0x20e   : > { %vm640_vm3 = vmand %vm588_vm0, %vm639_vm2 }
 0x20f   : > { %v593_v42 = vsub.f32 0.0, %v592_v41  ;;  %v641_v44 = vsel %vm640_vm3, 1.0, %v1188_v43  ;;  %vm658_vm7 = vmand %vm656_vm5, %vm657_vm6  ;;  %v590_v56 = vsel %vm588_vm0, %v589_v53, %v583_v40 }
 0x210   : > { %v642_v45 = vsel %vm609_vm1, %v641_v44, 0.0  ;;  %v659_v48 = vsel %vm658_vm7, 1.0, %v1188_v43  ;;  %v591_v60 = vmax.f32 %v590_v56, 0.0 }
 0x211   : > { %v594_v46 = vmul.f32 1.442695, %v593_v42  ;;  %643 = vadd.xlane.f32.xlu1 %v642_v45  ;;  %v660_v49 = vsel %vm609_vm1, %v659_v48, 0.0 }
 0x212   : > { %v584_v47 = vpop.f32.mrf.mxu2 }
 0x213   : > { %994 = vpow2.f32 %v594_v46 }
 0x219   : > { %v995_v50 = vpop.eup %994  ;;  %661 = vadd.xlane.f32.xlu1 %v660_v49 }
 0x21a   : > { %v596_v51 = vadd.f32 1.0, %v995_v50  ;;  %v599_v52 = vmul.f32 -0.5, %v995_v50  ;;  %v602_v55 = vand.u32 2147483647, %v995_v50 }
 0x21c   : > { %996 = vlog2.f32 %v596_v51  ;;  %v600_v54 = vadd.f32 1.0, %v599_v52  ;;  %vm603_vm8 = vcmp.lt.f32.partialorder %v602_v55, 0.0004427343 }
 0x21e   : > { %v601_v59 = vmul.f32 %v995_v50, %v600_v54 }
 0x222   : > { %v997_v57 = vpop.eup %996 }
 0x223   : > { %v598_v58 = vmul.f32 0.6931472, %v997_v57 }
 0x225   : > { %v604_v61 = vsel %vm603_vm8, %v601_v59, %v598_v58 }
 0x226   : > { %v605_v62 = vadd.f32 %v604_v61, %v591_v60 }
 0x228   : > { %v606_v63 = vmin.f32 %v605_v62, 100.0 }
 0x22a   : > { %v608_v0 = vsel %vm588_vm0, %v606_v63, 0.0  ;;  %v624_v2 = vsel %vm588_vm0, 0.0, %v606_v63 }
 0x22b   : > { %v610_v1 = vsel %vm609_vm1, %v608_v0, 0.0  ;;  %v625_v3 = vsel %vm609_vm1, %v624_v2, 0.0 }
 0x22c   : > { %611 = vadd.xlane.f32.xlu0 %v610_v1 }
 0x234   : > { %626 = vadd.xlane.f32.xlu0 %v625_v3 }
 0x284   : > { %v644_v4 = vpop.xlane.xlu1 %643 }
 0x285   : > { %v645_v6 = vrot.slane %v644_v4, 4 }
 0x287   : > { %v646_v11 = vadd.f32 %v645_v6, %v644_v4 }
 0x289   : > { %v647_v15 = vrot.slane %v646_v11, 2 }
 0x28b   : > { %v648_v22 = vadd.f32 %v647_v15, %v646_v11 }
 0x28c   : > { %v662_v5 = vpop.xlane.xlu1 %661 }
 0x28d   : > { %v663_v8 = vrot.slane %v662_v5, 4  ;;  %v649_v26 = vrot.slane %v648_v22, 1 }
 0x28f   : > { %v664_v12 = vadd.f32 %v663_v8, %v662_v5  ;;  %v650_v30 = vadd.f32 %v649_v26, %v648_v22 }
 0x291   : > { %v665_v17 = vrot.slane %v664_v12, 2 }
 0x293   : > { %v666_v23 = vadd.f32 %v665_v17, %v664_v12 }
 0x295   : > { %v667_v28 = vrot.slane %v666_v23, 1 }
 0x297   : > { %v668_v31 = vadd.f32 %v667_v28, %v666_v23 }
 0x29f   : > { %v612_v7 = vpop.xlane.xlu0 %611 }
 0x2a0   : > { %v613_v9 = vrot.slane %v612_v7, 4 }
 0x2a2   : > { %v614_v10 = vadd.f32 %v613_v9, %v612_v7 }
 0x2a4   : > { %v615_v13 = vrot.slane %v614_v10, 2 }
 0x2a6   : > { %v616_v14 = vadd.f32 %v615_v13, %v614_v10 }
 0x2a7   : > { %v627_v16 = vpop.xlane.xlu0 %626 }
 0x2a8   : > { %v628_v18 = vrot.slane %v627_v16, 4  ;;  %v617_v19 = vrot.slane %v616_v14, 1 }
 0x2aa   : > { %v629_v20 = vadd.f32 %v628_v18, %v627_v16  ;;  %v618_v21 = vadd.f32 %v617_v19, %v616_v14 }
 0x2ac   : > { %v630_v24 = vrot.slane %v629_v20, 2  ;;  %897 = vpush %v618_v21 }
 0x2ae   : > { %v631_v25 = vadd.f32 %v630_v24, %v629_v20 }
 0x2b0   : > { %v632_v27 = vrot.slane %v631_v25, 1 }
 0x2b2   : > { %v633_v29 = vadd.f32 %v632_v27, %v631_v25 }
 0x2b4   : > { %899 = vpush %v633_v29 }
 0x2b5   : > { %901 = vpush %v650_v30 }
 0x2b6   : > { %903 = vpush %v668_v31 }
 0x2dd   : > { %s898_s15 = spop %897 }
 0x2de   : > { %s620_s21 = sadd.f32 %s898_s15, %s607_s2  ;;  %s1191_s15 = smov [#allocation12]  }
 0x2e0   : > { %622 = sst [smem:[#allocation2]] %s620_s21 }
 0x2e5   : > { %s900_s29 = spop %899 }
 0x2e6   : > { %s635_s23 = sadd.f32 %s900_s29, %s870_s16  ;;  %s902_s25 = spop %901 }
 0x2e7   : > { %s652_s4 = sadd.f32 %s902_s25, %s871_s18  ;;  %s904_s20 = spop %903 }
 0x2e8   : > { %637 = sst [smem:[#allocation2 + $0x1]] %s635_s23 }
 0x2e9   : > { %654 = sst [smem:[#allocation2 + $0x2]] %s652_s4 }
 0x2ea   : > { %s670_s14 = sadd.f32 %s904_s20, %s872_s12 }
 0x2eb   : > { %s679_s28 = sadd.f32 %s635_s23, %s620_s21 }
 0x2ec   : > { %672 = sst [smem:[#allocation2 + $0x3]] %s670_s14 }
 0x2ed   : > { %s680_s26 = smul.f32 0.5, %s679_s28  ;;  %s686_s22 = sadd.f32 %s670_s14, %s652_s4 }
 0x2ef   : > { %s681_s17 = smul.f32 0.0625, %s680_s26 }
 0x2f0   : > { %s687_s19 = smul.f32 50.0, %s686_s22 }
 0x2f1   : > { %923 = sst [smem:[#allocation12]] (%p949_p1), %s681_s17 }
 0x2f2   : > { %s688_s2 = smul.f32 0.0625, %s687_s19 }
 0x2f4   : > { %924 = sst [smem:[#allocation12 + $0x1]] (%p949_p1), %s688_s2 }
 0x2f5   : > { %926 = dma.smem_to_hbm (%p949_p1), %s1191_s15, 16, %s698_s11, [#allocation6]  }
 0x2f6   : > { %1165 = dma.done.wait (%p949_p1), [#allocation6], 16  }
 0x2f7   : > { %1167 = vsyncadd (%p949_p1), [#allocation6], 4294967280 }
 0x2f8   : > { %706 = sfence }
 0x2f9 PF: > { %p24_p3 = scmp.ge.s32.totalorder %s1281_s24, 4   ;;  %s1427_s29 = smov %s1174_s30 }
 0x2fa   : > { %s1428_s30 = smov %s1178_s9  ;;  %s1429_s9 = smov %s1293_s27 }
 0x2fb   : > { %s1430_s10 = smov %s1281_s24  ;;  %26 = sbr.rel (!%p24_p3) target bundleno = 11 (0xb), region = 128 }
 0x300   :  { %712 = vsyncpa [#allocation5], 1 }
 0x301   :  { %714 = vsyncpa [#allocation5 + $0x1], 1 }
 0x302   :  { %715 = vsyncpa [#allocation8], 1 }
 0x303   :  { %717 = vsyncpa [#allocation8 + $0x1], 1 }
 0x304   :  { %718 = vsyncpa [#allocation11], 1 }
 0x305   :  { %719 = vsyncpa [#allocation6], 1 }
 0x306   :  { %721 = vsyncpa [#allocation6 + $0x1], 1 }

</bundles_post_ra>
